<compile_context>
chip_gen: v7x
topology: tpu7x:2x2x1
jax: 0.10.0
libtpu: 0.0.40
codegen_flags: <defaults>
</compile_context>

<pallas_src>
import functools
import math

import jax
import jax.numpy as jnp
from jax.experimental import pallas as pl
from jax.experimental.pallas import tpu as pltpu


def _ceil_div(a, b):
    return -(-a // b)


# --------------------------------------------------------------------------- #
# Kernel body: per-bin complex multiply on stacked (real, imag) f32 planes.   #
# The low/high-frequency gain is folded into the weight outside the kernel,   #
# so the body is 6 VPU ops per element -- purely HBM-bandwidth bound on every #
# TPU generation; no body-level micro-optimisation is attempted.              #
# --------------------------------------------------------------------------- #
def _complex_mul_kernel(x_ref, w_ref, o_ref):
    xr = x_ref[0]            # (row_tile, L)
    xi = x_ref[1]
    wr = w_ref[0]            # (1, L) effective weight (gain already folded in)
    wi = w_ref[1]
    o_ref[0] = xr * wr - xi * wi
    o_ref[1] = xr * wi + xi * wr


# --------------------------------------------------------------------------- #
# Host-side planning helpers (all static; jit caches per configuration).      #
# --------------------------------------------------------------------------- #
def _vmem_capacity_bytes():
    try:
        info = pltpu.get_tpu_info()
        for attr in ("vmem_capacity_bytes", "vmem_size_bytes", "vmem_bytes"):
            v = getattr(info, attr, None)
            if v:
                return int(v)
    except Exception:
        pass
    return 64 * 1024 * 1024      # conservative default (v7x per-TC VMEM)


def _plan_row_tiling(R, L, vmem_bytes):
    """Full-size row blocks only (no masked epilogue), generation-aware block
    bytes, and >= 4 grid steps when the work is non-trivial so v7x's two
    TensorCores and the DMA pipeline both engage."""
    # TODO(synk): extremely large, poorly 128-aligned freq_len (pack*F so big
    # that even an 8-row block overflows VMEM) would need an extra lane-tiled
    # grid axis; not needed for DMANet's freq_len scales.
    plane_row_bytes = 2 * L * 4                     # one packed row, both planes
    big_vmem = vmem_bytes >= 96 * 1024 * 1024       # v5e/v6e: 128 MiB; v7x: 64 MiB
    target_block_bytes = (4 if big_vmem else 2) * 1024 * 1024
    tile = max(8, (target_block_bytes // plane_row_bytes) // 8 * 8)

    if R < 32 and tile >= R:
        return R, 1, R                              # trivial work: one full block

    if tile >= R:
        tile = max(8, ((R + 3) // 4) // 8 * 8)
    grid = _ceil_div(R, tile)
    if R >= 32:
        grid = max(grid, 4)
    tile = _ceil_div(_ceil_div(R, grid), 8) * 8     # full blocks after row padding
    return tile, grid, tile * grid


# --------------------------------------------------------------------------- #
# pallas_call wrapper.                                                         #
# --------------------------------------------------------------------------- #
def _weight_spec(L, single_buffer):
    idx = lambda i: (0, 0, 0)
    if single_buffer:
        # Constant across grid steps -> one VMEM buffer is enough.
        return pl.BlockSpec((2, 1, L), idx, pipeline_mode=pl.Buffered(1))
    return pl.BlockSpec((2, 1, L), idx)


def _run_pallas(x, w, *, row_tile, vmem_limit, single_buffer_weight):
    _, R, L = x.shape
    grid = (R // row_tile,)
    return pl.pallas_call(
        _complex_mul_kernel,
        out_shape=jax.ShapeDtypeStruct((2, R, L), jnp.float32),
        grid=grid,
        in_specs=[
            pl.BlockSpec((2, row_tile, L), lambda i: (0, i, 0)),
            _weight_spec(L, single_buffer_weight),
        ],
        out_specs=pl.BlockSpec((2, row_tile, L), lambda i: (0, i, 0)),
        input_output_aliases={0: 0},
        compiler_params=pltpu.CompilerParams(
            dimension_semantics=("parallel",),
            vmem_limit_bytes=vmem_limit,
        ),
    )(x, w)


# --------------------------------------------------------------------------- #
# Traced glue (tiny, F-sized parameter math + layout plumbing).               #
# --------------------------------------------------------------------------- #
def _effective_weight(weight, low_weight, nyquist_idx, F, pack, L):
    lw = jax.nn.sigmoid(low_weight.astype(jnp.float32))
    gain = jnp.where(jnp.arange(F) < nyquist_idx, lw, 1.0 - lw)
    wr = jnp.real(weight).reshape(F).astype(jnp.float32) * gain
    wi = jnp.imag(weight).reshape(F).astype(jnp.float32) * gain
    return jnp.stack([jnp.tile(wr, pack), jnp.tile(wi, pack)]).reshape(2, 1, L)


def _pack_rows(x, rows, rows_padded, R, L):
    # x: (2, rows, F) float32 -> (2, R, L) with L a multiple of 128.
    if rows_padded != rows:
        x = jnp.pad(x, ((0, 0), (0, rows_padded - rows), (0, 0)))
    return x.reshape(2, R, L)


@functools.partial(jax.jit, static_argnames=(
    "pack", "row_tile", "rows_padded", "vmem_limit", "single_buffer_weight"))
def _forward_complex(freq, weight, low_weight, nyquist_idx, *, pack, row_tile,
                     rows_padded, vmem_limit, single_buffer_weight):
    B, C, F = freq.shape
    rows = B * C
    L = pack * F
    R = rows_padded // pack
    w = _effective_weight(weight, low_weight, nyquist_idx, F, pack, L)
    # One fused split pass (complex -> stacked planar f32) ...
    planar = jnp.stack([jnp.real(freq), jnp.imag(freq)]).astype(jnp.float32)
    x = _pack_rows(planar.reshape(2, rows, F), rows, rows_padded, R, L)
    out = _run_pallas(x, w, row_tile=row_tile, vmem_limit=vmem_limit,
                      single_buffer_weight=single_buffer_weight)
    # ... and one fused recombine pass (planar f32 -> complex).
    out = out.reshape(2, rows_padded, F)[:, :rows]
    return jax.lax.complex(out[0], out[1]).reshape(B, C, F)


@functools.partial(jax.jit, static_argnames=(
    "pack", "row_tile", "rows_padded", "vmem_limit", "single_buffer_weight"))
def _forward_planar(x_planar, weight, low_weight, nyquist_idx, *, pack, row_tile,
                    rows_padded, vmem_limit, single_buffer_weight):
    _, B, C, F = x_planar.shape
    rows = B * C
    L = pack * F
    R = rows_padded // pack
    w = _effective_weight(weight, low_weight, nyquist_idx, F, pack, L)
    x = _pack_rows(x_planar.astype(jnp.float32).reshape(2, rows, F),
                   rows, rows_padded, R, L)
    out = _run_pallas(x, w, row_tile=row_tile, vmem_limit=vmem_limit,
                      single_buffer_weight=single_buffer_weight)
    out = out.reshape(2, rows_padded, F)[:, :rows]
    return out.reshape(2, B, C, F)


_WEIGHT_SINGLE_BUFFER = None     # None = unprobed, then True/False


def _call_with_weight_buffering(fn, *args, **static):
    """Prefer a single-buffered resident weight block; fall back transparently
    if this JAX build rejects pipeline_mode on pallas_call BlockSpecs."""
    global _WEIGHT_SINGLE_BUFFER
    if _WEIGHT_SINGLE_BUFFER in (None, True):
        try:
            out = fn(*args, single_buffer_weight=True, **static)
            _WEIGHT_SINGLE_BUFFER = True
            return out
        except Exception:
            if _WEIGHT_SINGLE_BUFFER:
                raise
            _WEIGHT_SINGLE_BUFFER = False
    return fn(*args, single_buffer_weight=False, **static)


# --------------------------------------------------------------------------- #
# Layer.                                                                       #
# --------------------------------------------------------------------------- #
class FrequencyProcessingLayerPallas:
    """JAX/Pallas port of DMANet.FrequencyProcessingLayer (forward only)."""

    def __init__(self, in_channels, out_channels, freq_len,
                 kernel_size=2, down_sampling_window=None):
        self.in_channels = in_channels
        self.out_channels = out_channels
        self.freq_len = freq_len
        self.kernel_size = kernel_size
        self.down_sampling_window = down_sampling_window
        # Parameters (deterministic init matching the PyTorch __init__):
        self.weight = jnp.ones((1, 1, freq_len), dtype=jnp.complex64)
        self.low_weight = jnp.float32(0.9)

    def _nyquist_idx(self):
        esr = math.sqrt(
            min(self.kernel_size, self.out_channels / self.in_channels)
            / (self.down_sampling_window or 1.0))
        return int(self.freq_len * (esr / 2.0))

    def _plan(self, B, C):
        F = self.freq_len
        rows = B * C
        pack = 128 // math.gcd(F, 128)       # smallest k with (k*F) % 128 == 0
        L = pack * F
        R = _ceil_div(rows, pack)
        vmem_bytes = _vmem_capacity_bytes()
        row_tile, _grid, R_padded = _plan_row_tiling(R, L, vmem_bytes)
        rows_padded = R_padded * pack
        block_bytes = 2 * row_tile * L * 4
        live_bytes = 4 * block_bytes + 4 * (2 * L * 4)   # in/out x 2 bufs + weights
        base = (64 if vmem_bytes >= 96 * 1024 * 1024 else 32) * 1024 * 1024
        vmem_limit = int(min(max(base, 2 * live_bytes), (vmem_bytes * 3) // 4))
        return dict(pack=pack, row_tile=row_tile, rows_padded=rows_padded,
                    vmem_limit=vmem_limit)

    def __call__(self, freq):
        """freq: complex64 (B, C, freq_len) -> complex64 (B, C, freq_len)."""
        B, C, F = freq.shape
        assert F == self.freq_len
        static = self._plan(B, C)
        return _call_with_weight_buffering(
            _forward_complex, freq, self.weight, self.low_weight,
            self._nyquist_idx(), **static)

    def forward_planar(self, x_planar):
        """Repack-free path: x_planar is float32 (2, B, C, F) = stacked (real, imag)."""
        two, B, C, F = x_planar.shape
        assert two == 2 and F == self.freq_len
        static = self._plan(B, C)
        return _call_with_weight_buffering(
            _forward_planar, x_planar, self.weight, self.low_weight,
            self._nyquist_idx(), **static)


# --------------------------------------------------------------------------- #
# Pure-JAX reference mirroring the PyTorch forward.                            #
# --------------------------------------------------------------------------- #
def _reference(freq, weight, low_weight, in_ch, out_ch, ksz, dsw):
    B, C, F = freq.shape
    esr = math.sqrt(min(ksz, out_ch / in_ch) / (dsw or 1.0))
    nyq = int(F * (esr / 2.0))
    mask = (jnp.arange(F) < nyq).astype(freq.dtype)[None, None, :]
    low = freq * mask
    high = freq * (1 - mask)
    lw = jax.nn.sigmoid(low_weight)
    return lw * (low * weight) + (1 - lw) * (high * weight)


if __name__ == "__main__":
    key = jax.random.PRNGKey(0)
    k1, k2, k3, k4, k5, k6 = jax.random.split(key, 6)

    # Case 1: default parameters (weight = ones, low_weight = 0.9).
    B, C_in, C_out, F = 2, 4, 8, 16
    freq = (jax.random.normal(k1, (B, C_in, F), dtype=jnp.float32)
            + 1j * jax.random.normal(k2, (B, C_in, F), dtype=jnp.float32)
            ).astype(jnp.complex64)
    layer = FrequencyProcessingLayerPallas(
        in_channels=C_in, out_channels=C_out, freq_len=F,
        kernel_size=2, down_sampling_window=2)
    out = jax.block_until_ready(layer(freq))
    ref = _reference(freq, layer.weight, layer.low_weight, C_in, C_out, 2, 2)
    assert out.shape == (B, C_in, F) and out.dtype == jnp.complex64
    assert jnp.allclose(out, ref, atol=1e-5, rtol=1e-5)

    # Planar fast path (no complex<->planar repack at the layer boundary).
    x_planar = jnp.stack([jnp.real(freq), jnp.imag(freq)]).astype(jnp.float32)
    out_planar = jax.block_until_ready(layer.forward_planar(x_planar))
    assert jnp.allclose(jax.lax.complex(out_planar[0], out_planar[1]), ref,
                        atol=1e-5, rtol=1e-5)

    # Case 2: non-trivial complex weight / low_weight (full complex path).
    layer.weight = (jax.random.normal(k3, (1, 1, F), dtype=jnp.float32)
                    + 1j * jax.random.normal(k4, (1, 1, F), dtype=jnp.float32)
                    ).astype(jnp.complex64)
    layer.low_weight = jnp.float32(0.3)
    out = jax.block_until_ready(layer(freq))
    ref = _reference(freq, layer.weight, layer.low_weight, C_in, C_out, 2, 2)
    assert jnp.allclose(out, ref, atol=1e-5, rtol=1e-5)

    # Case 3: odd row count with freq_len already a multiple of 128
    # (exercises row padding, a multi-step grid and the "parallel" axis).
    B2, C2, F2 = 3, 11, 128
    layer2 = FrequencyProcessingLayerPallas(
        in_channels=C2, out_channels=C2, freq_len=F2,
        kernel_size=2, down_sampling_window=None)
    freq2 = (jax.random.normal(k5, (B2, C2, F2), dtype=jnp.float32)
             + 1j * jax.random.normal(k6, (B2, C2, F2), dtype=jnp.float32)
             ).astype(jnp.complex64)
    out2 = jax.block_until_ready(layer2(freq2))
    ref2 = _reference(freq2, layer2.weight, layer2.low_weight, C2, C2, 2, None)
    assert jnp.allclose(out2, ref2, atol=1e-5, rtol=1e-5)

    print("KERNEL_OK")
</pallas_src>

<mosaic_0001>
module attributes {stable_mosaic.version = 11 : i64} {
  func.func @_complex_mul_kernel(%arg0: i32, %arg1: memref<2x1x128xf32, #tpu.memory_space<vmem>>, %arg2: memref<2x1x128xf32, #tpu.memory_space<vmem>>, %arg3: memref<2x1x128xf32, #tpu.memory_space<vmem>>) attributes {dimension_semantics = [#tpu.dimension_semantics<parallel>], iteration_bounds = array<i64: 1>, scalar_prefetch = 0 : i64, scratch_operands = 0 : i64, tpu.core_type = #tpu.core_type<tc>, window_params = [{transform_indices = @transform_0, window_bounds = array<i64: 2, 1, 128>}, {pipeline_mode = #tpu.pipeline_mode<synchronous>, transform_indices = @transform_1, window_bounds = array<i64: 2, 1, 128>}, {transform_indices = @transform_2, window_bounds = array<i64: 2, 1, 128>}]} {
    %c0 = arith.constant 0 : index
    %c0_0 = arith.constant 0 : index
    %c0_1 = arith.constant 0 : index
    %0 = vector.load %arg1[%c0, %c0_0, %c0_1] : memref<2x1x128xf32, #tpu.memory_space<vmem>>, vector<1x1x128xf32>
    %1 = vector.shape_cast %0 : vector<1x1x128xf32> to vector<1x128xf32>
    %c1 = arith.constant 1 : index
    %c0_2 = arith.constant 0 : index
    %c0_3 = arith.constant 0 : index
    %2 = vector.load %arg1[%c1, %c0_2, %c0_3] : memref<2x1x128xf32, #tpu.memory_space<vmem>>, vector<1x1x128xf32>
    %3 = vector.shape_cast %2 : vector<1x1x128xf32> to vector<1x128xf32>
    %c0_4 = arith.constant 0 : index
    %c0_5 = arith.constant 0 : index
    %c0_6 = arith.constant 0 : index
    %4 = vector.load %arg2[%c0_4, %c0_5, %c0_6] : memref<2x1x128xf32, #tpu.memory_space<vmem>>, vector<1x1x128xf32>
    %5 = vector.shape_cast %4 : vector<1x1x128xf32> to vector<1x128xf32>
    %c1_7 = arith.constant 1 : index
    %c0_8 = arith.constant 0 : index
    %c0_9 = arith.constant 0 : index
    %6 = vector.load %arg2[%c1_7, %c0_8, %c0_9] : memref<2x1x128xf32, #tpu.memory_space<vmem>>, vector<1x1x128xf32>
    %7 = vector.shape_cast %6 : vector<1x1x128xf32> to vector<1x128xf32>
    %8 = arith.mulf %1, %5 : vector<1x128xf32>
    %9 = arith.mulf %3, %7 : vector<1x128xf32>
    %10 = arith.subf %8, %9 : vector<1x128xf32>
    %c0_10 = arith.constant 0 : index
    %c0_11 = arith.constant 0 : index
    %c0_12 = arith.constant 0 : index
    %11 = vector.load %arg3[%c0_10, %c0_11, %c0_12] : memref<2x1x128xf32, #tpu.memory_space<vmem>>, vector<1x1x128xf32>
    %12 = vector.shape_cast %11 : vector<1x1x128xf32> to vector<1x128xf32>
    %13 = vector.shape_cast %10 : vector<1x128xf32> to vector<1x1x128xf32>
    tpu.vector_store %arg3[%c0_10, %c0_11, %c0_12], %13 {strides = array<i32>} : memref<2x1x128xf32, #tpu.memory_space<vmem>>, vector<1x1x128xf32>,
    %14 = arith.mulf %1, %7 : vector<1x128xf32>
    %15 = arith.mulf %3, %5 : vector<1x128xf32>
    %16 = arith.addf %14, %15 : vector<1x128xf32>
    %c1_13 = arith.constant 1 : index
    %c0_14 = arith.constant 0 : index
    %c0_15 = arith.constant 0 : index
    %17 = vector.load %arg3[%c1_13, %c0_14, %c0_15] : memref<2x1x128xf32, #tpu.memory_space<vmem>>, vector<1x1x128xf32>
    %18 = vector.shape_cast %17 : vector<1x1x128xf32> to vector<1x128xf32>
    %19 = vector.shape_cast %16 : vector<1x128xf32> to vector<1x1x128xf32>
    tpu.vector_store %arg3[%c1_13, %c0_14, %c0_15], %19 {strides = array<i32>} : memref<2x1x128xf32, #tpu.memory_space<vmem>>, vector<1x1x128xf32>,
    return
  }
  func.func @transform_0(%arg0: i32) -> (i32, i32, i32) {
    %c0_i32 = arith.constant 0 : i32
    %c0_i32_0 = arith.constant 0 : i32
    %c0_i32_1 = arith.constant 0 : i32
    return %c0_i32, %arg0, %c0_i32_0 : i32, i32, i32
  }
  func.func @transform_1(%arg0: i32) -> (i32, i32, i32) {
    %c0_i32 = arith.constant 0 : i32
    %c0_i32_0 = arith.constant 0 : i32
    %c0_i32_1 = arith.constant 0 : i32
    %c0_i32_2 = arith.constant 0 : i32
    return %c0_i32, %c0_i32_0, %c0_i32_1 : i32, i32, i32
  }
  func.func @transform_2(%arg0: i32) -> (i32, i32, i32) {
    %c0_i32 = arith.constant 0 : i32
    %c0_i32_0 = arith.constant 0 : i32
    %c0_i32_1 = arith.constant 0 : i32
    return %c0_i32, %arg0, %c0_i32_0 : i32, i32, i32
  }
}

module attributes {stable_mosaic.version = 11 : i64} {
  func.func @_complex_mul_kernel(%arg0: i32, %arg1: memref<2x1x128xf32, #tpu.memory_space<vmem>>, %arg2: memref<2x1x128xf32, #tpu.memory_space<vmem>>, %arg3: memref<2x1x128xf32, #tpu.memory_space<vmem>>) attributes {dimension_semantics = [#tpu.dimension_semantics<parallel>], iteration_bounds = array<i64: 1>, scalar_prefetch = 0 : i64, scratch_operands = 0 : i64, tpu.core_type = #tpu.core_type<tc>, window_params = [{transform_indices = @transform_0, window_bounds = array<i64: 2, 1, 128>}, {pipeline_mode = #tpu.pipeline_mode<synchronous>, transform_indices = @transform_1, window_bounds = array<i64: 2, 1, 128>}, {transform_indices = @transform_2, window_bounds = array<i64: 2, 1, 128>}]} {
    %c0 = arith.constant 0 : index
    %c0_0 = arith.constant 0 : index
    %c0_1 = arith.constant 0 : index
    %0 = vector.load %arg1[%c0, %c0_0, %c0_1] : memref<2x1x128xf32, #tpu.memory_space<vmem>>, vector<1x1x128xf32>
    %1 = vector.shape_cast %0 : vector<1x1x128xf32> to vector<1x128xf32>
    %c1 = arith.constant 1 : index
    %c0_2 = arith.constant 0 : index
    %c0_3 = arith.constant 0 : index
    %2 = vector.load %arg1[%c1, %c0_2, %c0_3] : memref<2x1x128xf32, #tpu.memory_space<vmem>>, vector<1x1x128xf32>
    %3 = vector.shape_cast %2 : vector<1x1x128xf32> to vector<1x128xf32>
    %c0_4 = arith.constant 0 : index
    %c0_5 = arith.constant 0 : index
    %c0_6 = arith.constant 0 : index
    %4 = vector.load %arg2[%c0_4, %c0_5, %c0_6] : memref<2x1x128xf32, #tpu.memory_space<vmem>>, vector<1x1x128xf32>
    %5 = vector.shape_cast %4 : vector<1x1x128xf32> to vector<1x128xf32>
    %c1_7 = arith.constant 1 : index
    %c0_8 = arith.constant 0 : index
    %c0_9 = arith.constant 0 : index
    %6 = vector.load %arg2[%c1_7, %c0_8, %c0_9] : memref<2x1x128xf32, #tpu.memory_space<vmem>>, vector<1x1x128xf32>
    %7 = vector.shape_cast %6 : vector<1x1x128xf32> to vector<1x128xf32>
    %8 = arith.mulf %1, %5 : vector<1x128xf32>
    %9 = arith.mulf %3, %7 : vector<1x128xf32>
    %10 = arith.subf %8, %9 : vector<1x128xf32>
    %c0_10 = arith.constant 0 : index
    %c0_11 = arith.constant 0 : index
    %c0_12 = arith.constant 0 : index
    %11 = vector.load %arg3[%c0_10, %c0_11, %c0_12] : memref<2x1x128xf32, #tpu.memory_space<vmem>>, vector<1x1x128xf32>
    %12 = vector.shape_cast %11 : vector<1x1x128xf32> to vector<1x128xf32>
    %13 = vector.shape_cast %10 : vector<1x128xf32> to vector<1x1x128xf32>
    tpu.vector_store %arg3[%c0_10, %c0_11, %c0_12], %13 {strides = array<i32>} : memref<2x1x128xf32, #tpu.memory_space<vmem>>, vector<1x1x128xf32>,
    %14 = arith.mulf %1, %7 : vector<1x128xf32>
    %15 = arith.mulf %3, %5 : vector<1x128xf32>
    %16 = arith.addf %14, %15 : vector<1x128xf32>
    %c1_13 = arith.constant 1 : index
    %c0_14 = arith.constant 0 : index
    %c0_15 = arith.constant 0 : index
    %17 = vector.load %arg3[%c1_13, %c0_14, %c0_15] : memref<2x1x128xf32, #tpu.memory_space<vmem>>, vector<1x1x128xf32>
    %18 = vector.shape_cast %17 : vector<1x1x128xf32> to vector<1x128xf32>
    %19 = vector.shape_cast %16 : vector<1x128xf32> to vector<1x1x128xf32>
    tpu.vector_store %arg3[%c1_13, %c0_14, %c0_15], %19 {strides = array<i32>} : memref<2x1x128xf32, #tpu.memory_space<vmem>>, vector<1x1x128xf32>,
    return
  }
  func.func @transform_0(%arg0: i32) -> (i32, i32, i32) {
    %c0_i32 = arith.constant 0 : i32
    %c0_i32_0 = arith.constant 0 : i32
    %c0_i32_1 = arith.constant 0 : i32
    return %c0_i32, %arg0, %c0_i32_0 : i32, i32, i32
  }
  func.func @transform_1(%arg0: i32) -> (i32, i32, i32) {
    %c0_i32 = arith.constant 0 : i32
    %c0_i32_0 = arith.constant 0 : i32
    %c0_i32_1 = arith.constant 0 : i32
    %c0_i32_2 = arith.constant 0 : i32
    return %c0_i32, %c0_i32_0, %c0_i32_1 : i32, i32, i32
  }
  func.func @transform_2(%arg0: i32) -> (i32, i32, i32) {
    %c0_i32 = arith.constant 0 : i32
    %c0_i32_0 = arith.constant 0 : i32
    %c0_i32_1 = arith.constant 0 : i32
    return %c0_i32, %arg0, %c0_i32_0 : i32, i32, i32
  }
}

</mosaic_0001>

<bundles_post_ra>
// kernel: custom-call.3
= control target key start
LH: loop header
LB: loop body
LE: loop exit
PB: predicated region body
PF: predicated region fallthrough
CT: control target
= control target key end

     0   :  { %s59_s0 = inlined_call_operand.hbm [shape: c64[1,1,16], index: 0, kind: input, shape index: {}]   ;;  %s60_s1 = inlined_call_operand.vmem [shape: f32[1,1,16], index: 1, kind: output, shape index: {}]  }
   0x1   :  { %s2_s8 = scalar_lea.hbm %s59_s0, 16 }
   0x2   :  { %3 = vsyncpa [#allocation0], 0  ;;  %s4_s11 = sshll.u32 %s60_s1, 4  ;;  %s34_s14 = scalar_lea.hbm %s59_s0, 32  ;;  %s5_s11 = int_to_ptr.vmem [resolvable:$true] %s4_s11 }
   0x3   :  { %p11_p0 = scmp.ne.s32.totalorder %s2_s8, %s34_s14  ;;  %p13_p1 = scmp.lt.u32.totalorder %s2_s8, %s59_s0 }
   0x4   :  { %p14_p2 = scmp.lt.u32.totalorder %s34_s14, %s34_s14  ;;  %p16_p4 = scmp.lt.u32.totalorder %s34_s14, %s2_s8 }
   0x6   :  { %p15_p3 = por %p14_p2, %p13_p1 }
   0x8   :  { %p17_p5 = por %p16_p4, %p15_p3 }
   0xa   :  { %p18_p6 = pnand %p17_p5, %p11_p0 }
   0xc   :  { %21 = shalt.err (!%p18_p6)  }
   0xd   :  { %s22_s17 = scalar_lea.vmem %s5_s11, 16  ;;  %p27_p8 = scmp.lt.s32.totalorder %s5_s11, %s5_s11 }
   0xe   :  { %p23_p7 = scmp.ne.s32.totalorder %s5_s11, %s22_s17  ;;  %p28_p9 = scmp.lt.s32.totalorder %s22_s17, %s22_s17 }
  0x10   :  { %p29_p10 = por %p28_p9, %p27_p8 }
  0x12   :  { %p30_p11 = pnand %p29_p10, %p23_p7 }
  0x14   :  { %33 = shalt.err (!%p30_p11)  }
  0x15   :  { %7 = dma.hbm_to_vmem [thread:$0]  %s2_s8, 16, %s5_s11, [#allocation0] }
  0x16   :  { %35 = dma.done.wait [#allocation0], 16  }
  0x17   :  { %36 = vsyncadd [#allocation0], 4294967280 }
  0x18   :  { %9 = vsyncpa [#allocation0], 1 }

// kernel: custom-call.2
= control target key start
LH: loop header
LB: loop body
LE: loop exit
PB: predicated region body
PF: predicated region fallthrough
CT: control target
= control target key end

     0   :  { %2 = vsyncpa [#allocation0], 0  ;;  %s61_s0 = inlined_call_operand.hbm [shape: c64[1,1,16], index: 0, kind: input, shape index: {}]   ;;  %s62_s1 = inlined_call_operand.vmem [shape: f32[1,1,16], index: 1, kind: output, shape index: {}]  }
   0x1   :  { %s3_s8 = sshll.u32 %s62_s1, 4  ;;  %s9_s11 = scalar_lea.hbm %s61_s0, 16  ;;  %s4_s8 = int_to_ptr.vmem [resolvable:$true] %s3_s8 }
   0x2   :  { %p10_p0 = scmp.ne.s32.totalorder %s61_s0, %s9_s11  ;;  %s11_s16 = scalar_lea.hbm %s61_s0, 32 }
   0x3   :  { %p12_p1 = scmp.lt.u32.totalorder %s11_s16, %s9_s11  ;;  %p13_p2 = scmp.lt.u32.totalorder %s9_s11, %s61_s0 }
   0x5   :  { %p14_p3 = por %p13_p2, %p12_p1 }
   0x7   :  { %p15_p4 = pnand %p14_p3, %p10_p0 }
   0x9   :  { %18 = shalt.err (!%p15_p4)  }
   0xa   :  { %s19_s1 = scalar_lea.vmem %s4_s8, 16  ;;  %p24_p6 = scmp.lt.s32.totalorder %s4_s8, %s4_s8 }
   0xb   :  { %p20_p5 = scmp.ne.s32.totalorder %s4_s8, %s19_s1  ;;  %p25_p7 = scmp.lt.s32.totalorder %s19_s1, %s19_s1 }
   0xd   :  { %p26_p8 = por %p25_p7, %p24_p6 }
   0xf   :  { %p27_p9 = pnand %p26_p8, %p20_p5 }
  0x11   :  { %30 = shalt.err (!%p27_p9)  }
  0x12   :  { %6 = dma.hbm_to_vmem [thread:$0]  %s61_s0, 16, %s4_s8, [#allocation0] }
  0x13   :  { %31 = dma.done.wait [#allocation0], 16  }
  0x14   :  { %32 = vsyncadd [#allocation0], 4294967280 }
  0x15   :  { %8 = vsyncpa [#allocation0], 1 }

// kernel: tile.17
= control target key start
LH: loop header
LB: loop body
LE: loop exit
PB: predicated region body
PF: predicated region fallthrough
CT: control target
= control target key end

     0   :  { %s22_s0 = inlined_call_operand.vmem [shape: f32[16], index: 0, kind: input, shape index: {}]   ;;  %s23_s1 = inlined_call_operand.vmem [shape: f32[8,16], index: 1, kind: output, shape index: {}]  }
   0x1   :  { %v4_v0 = vld [vmem:[%s22_s0] ss:$0 sm:$0xff] }
   0x2   :  { %5 = vst [vmem:[%s23_s1] sm:$0xff] %v4_v0 }

// kernel: custom-call.1
= control target key start
LH: loop header
LB: loop body
LE: loop exit
PB: predicated region body
PF: predicated region fallthrough
CT: control target
= control target key end

     0   :  { %s59_s0 = inlined_call_operand.hbm [shape: c64[2,4,16], index: 0, kind: input, shape index: {}]   ;;  %s60_s1 = inlined_call_operand.vmem [shape: f32[2,4,16], index: 1, kind: output, shape index: {}]  }
   0x1   :  { %s2_s8 = scalar_lea.hbm %s59_s0, 128 }
   0x2   :  { %3 = vsyncpa [#allocation0], 0  ;;  %s4_s11 = sshll.u32 %s60_s1, 4  ;;  %s34_s14 = scalar_lea.hbm %s59_s0, 256  ;;  %s5_s11 = int_to_ptr.vmem [resolvable:$true] %s4_s11 }
   0x3   :  { %p11_p0 = scmp.ne.s32.totalorder %s2_s8, %s34_s14  ;;  %p13_p1 = scmp.lt.u32.totalorder %s2_s8, %s59_s0 }
   0x4   :  { %p14_p2 = scmp.lt.u32.totalorder %s34_s14, %s34_s14  ;;  %p16_p4 = scmp.lt.u32.totalorder %s34_s14, %s2_s8 }
   0x6   :  { %p15_p3 = por %p14_p2, %p13_p1 }
   0x8   :  { %p17_p5 = por %p16_p4, %p15_p3 }
   0xa   :  { %p18_p6 = pnand %p17_p5, %p11_p0 }
   0xc   :  { %21 = shalt.err (!%p18_p6)  }
   0xd   :  { %s22_s17 = scalar_lea.vmem %s5_s11, 128  ;;  %p27_p8 = scmp.lt.s32.totalorder %s5_s11, %s5_s11 }
   0xe   :  { %p23_p7 = scmp.ne.s32.totalorder %s5_s11, %s22_s17  ;;  %p28_p9 = scmp.lt.s32.totalorder %s22_s17, %s22_s17 }
  0x10   :  { %p29_p10 = por %p28_p9, %p27_p8 }
  0x12   :  { %p30_p11 = pnand %p29_p10, %p23_p7 }
  0x14   :  { %33 = shalt.err (!%p30_p11)  }
  0x15   :  { %7 = dma.hbm_to_vmem [thread:$0]  %s2_s8, 128, %s5_s11, [#allocation0] }
  0x16   :  { %35 = dma.done.wait [#allocation0], 128  }
  0x17   :  { %36 = vsyncadd [#allocation0], 4294967168 }
  0x18   :  { %9 = vsyncpa [#allocation0], 1 }

// kernel: tile.19
= control target key start
LH: loop header
LB: loop body
LE: loop exit
PB: predicated region body
PF: predicated region fallthrough
CT: control target
= control target key end

     0   :  { %s67_s10 = smov 112   ;;  %s68_s11 = smov 80   ;;  %vm3_vm0 = vcmask 130048   ;;  %vm9_vm1 = vcmask 1048448   ;;  %vm15_vm2 = vcmask 917248   ;;  %vm21_vm3 = vcmask 786048   ;;  %s111_s0 = inlined_call_operand.vmem [shape: f32[8,16], index: 0, kind: input, shape index: {}]   ;;  %s112_s1 = inlined_call_operand.vmem [shape: f32[1,128], index: 1, kind: output, shape index: {}]  }
   0x1   :  { %v53_v0 = vld [vmem:[%s111_s0 + $0x7] sm:$0x1]   ;;  %v55_v1 = vld [vmem:[%s111_s0 + $0x5] sm:$0x1]   ;;  %v54_v2 = vld [vmem:[%s111_s0 + $0x6] sm:$0x1]  }
   0x2   :  { %7 = vrot.lane.b32.xlu0 %v53_v0, %s67_s10  ;;  %19 = vrot.lane.b32.xlu1 %v55_v1, %s68_s11  ;;  %v56_v3 = vld [vmem:[%s111_s0 + $0x4] sm:$0x1]   ;;  %v2_v4 = vld [vmem:[%s111_s0] sm:$0x1]   ;;  %s69_s18 = smov 96   ;;  %s70_s19 = smov 64  }
   0x3   :  { %4 = vst.msk [vmem:[#allocation0] sm:$0x1] %vm3_vm0, %v2_v4   ;;  %v57_v5 = vld [vmem:[%s111_s0 + $0x3] sm:$0x1]   ;;  %v58_v6 = vld [vmem:[%s111_s0 + $0x2] sm:$0x1]  }
   0x4   :  { %s71_s24 = smov 48   ;;  %s72_s25 = smov 32   ;;  %v59_v7 = vld [vmem:[%s111_s0 + $0x1] sm:$0x1]   ;;  %vm27_vm4 = vcmask 654848   ;;  %vm33_vm5 = vcmask 523648  }
   0x5   :  { %s73_s0 = smov 16   ;;  %vm39_vm6 = vcmask 392448   ;;  %vm45_vm7 = vcmask 261248  }
   0x6   :  { %13 = vrot.lane.b32.xlu0 %v54_v2, %s69_s18  ;;  %25 = vrot.lane.b32.xlu1 %v56_v3, %s70_s19 }
   0xa   :  { %31 = vrot.lane.b32.xlu0 %v57_v5, %s71_s24  ;;  %37 = vrot.lane.b32.xlu1 %v58_v6, %s72_s25 }
   0xe   :  { %43 = vrot.lane.b32.xlu0 %v59_v7, %s73_s0 }
  0x74   :  { %v8_v8 = vpop.permute.xlu0 %7   ;;  %v20_v9 = vpop.permute.xlu1 %19  }
  0x75   :  { %10 = vst.msk [vmem:[#allocation0] sm:$0x1] %vm9_vm1, %v8_v8  }
  0x78   :  { %v14_v10 = vpop.permute.xlu0 %13   ;;  %v26_v11 = vpop.permute.xlu1 %25  }
  0x79   :  { %16 = vst.msk [vmem:[#allocation0] sm:$0x1] %vm15_vm2, %v14_v10  }
  0x7a   :  { %22 = vst.msk [vmem:[#allocation0] sm:$0x1] %vm21_vm3, %v20_v9  }
  0x7b   :  { %28 = vst.msk [vmem:[#allocation0] sm:$0x1] %vm27_vm4, %v26_v11  }
  0x7c   :  { %v32_v12 = vpop.permute.xlu0 %31   ;;  %v38_v13 = vpop.permute.xlu1 %37  }
  0x7d   :  { %34 = vst.msk [vmem:[#allocation0] sm:$0x1] %vm33_vm5, %v32_v12  }
  0x7e   :  { %40 = vst.msk [vmem:[#allocation0] sm:$0x1] %vm39_vm6, %v38_v13  }
  0x80   :  { %v44_v14 = vpop.permute.xlu0 %43  }
  0x81   :  { %46 = vst.msk [vmem:[#allocation0] sm:$0x1] %vm45_vm7, %v44_v14  }
  0x88   :  { %v50_v15 = vld [vmem:[#allocation0] sm:$0x1] }
  0x89   :  { %52 = vst [vmem:[%s112_s1] sm:$0x1] %v50_v15 }

// kernel: custom-call
= control target key start
LH: loop header
LB: loop body
LE: loop exit
PB: predicated region body
PF: predicated region fallthrough
CT: control target
= control target key end

     0   :  { %2 = vsyncpa [#allocation0], 0  ;;  %s61_s0 = inlined_call_operand.hbm [shape: c64[2,4,16], index: 0, kind: input, shape index: {}]   ;;  %s62_s1 = inlined_call_operand.vmem [shape: f32[2,4,16], index: 1, kind: output, shape index: {}]  }
   0x1   :  { %s3_s8 = sshll.u32 %s62_s1, 4  ;;  %s9_s11 = scalar_lea.hbm %s61_s0, 128  ;;  %s4_s8 = int_to_ptr.vmem [resolvable:$true] %s3_s8 }
   0x2   :  { %p10_p0 = scmp.ne.s32.totalorder %s61_s0, %s9_s11  ;;  %s11_s16 = scalar_lea.hbm %s61_s0, 256 }
   0x3   :  { %p12_p1 = scmp.lt.u32.totalorder %s11_s16, %s9_s11  ;;  %p13_p2 = scmp.lt.u32.totalorder %s9_s11, %s61_s0 }
   0x5   :  { %p14_p3 = por %p13_p2, %p12_p1 }
   0x7   :  { %p15_p4 = pnand %p14_p3, %p10_p0 }
   0x9   :  { %18 = shalt.err (!%p15_p4)  }
   0xa   :  { %s19_s1 = scalar_lea.vmem %s4_s8, 128  ;;  %p24_p6 = scmp.lt.s32.totalorder %s4_s8, %s4_s8 }
   0xb   :  { %p20_p5 = scmp.ne.s32.totalorder %s4_s8, %s19_s1  ;;  %p25_p7 = scmp.lt.s32.totalorder %s19_s1, %s19_s1 }
   0xd   :  { %p26_p8 = por %p25_p7, %p24_p6 }
   0xf   :  { %p27_p9 = pnand %p26_p8, %p20_p5 }
  0x11   :  { %30 = shalt.err (!%p27_p9)  }
  0x12   :  { %6 = dma.hbm_to_vmem [thread:$0]  %s61_s0, 128, %s4_s8, [#allocation0] }
  0x13   :  { %31 = dma.done.wait [#allocation0], 128  }
  0x14   :  { %32 = vsyncadd [#allocation0], 4294967168 }
  0x15   :  { %8 = vsyncpa [#allocation0], 1 }

// kernel: custom-call.4
= control target key start
LH: loop header
LB: loop body
LE: loop exit
PB: predicated region body
PF: predicated region fallthrough
CT: control target
= control target key end

     0   :  { %s126_s0 = inlined_call_operand.vmem [shape: f32[2,4,16], index: 0, kind: input, shape index: {}]   ;;  %s127_s1 = inlined_call_operand.vmem [shape: f32[2,4,16], index: 1, kind: input, shape index: {}]   ;;  %s128_s2 = inlined_call_operand.hbm [shape: c64[2,4,16], index: 2, kind: output, shape index: {}]  }
   0x1   :  { %s87_s11 = scalar_lea.hbm %s128_s2, 128 }
   0x2   :  { %4 = vsyncpa [#allocation0], 0  ;;  %s5_s14 = sshll.u32 %s126_s0, 4  ;;  %s6_s14 = int_to_ptr.vmem [resolvable:$true] %s5_s14 }
   0x3   :  { %s18_s15 = scalar_lea.vmem %s6_s14, 128  ;;  %p23_p1 = scmp.lt.s32.totalorder %s6_s14, %s6_s14 }
   0x4   :  { %p19_p0 = scmp.ne.s32.totalorder %s6_s14, %s18_s15  ;;  %p24_p2 = scmp.lt.s32.totalorder %s18_s15, %s18_s15 }
   0x6   :  { %p25_p3 = por %p24_p2, %p23_p1 }
   0x8   :  { %p26_p4 = pnand %p25_p3, %p19_p0 }
   0xa   :  { %29 = shalt.err (!%p26_p4)  }
   0xb   :  { %p31_p5 = scmp.ne.s32.totalorder %s128_s2, %s87_s11  ;;  %s32_s0 = scalar_lea.hbm %s128_s2, 256 }
   0xc   :  { %p33_p6 = scmp.lt.u32.totalorder %s32_s0, %s87_s11  ;;  %p34_p7 = scmp.lt.u32.totalorder %s87_s11, %s128_s2 }
   0xe   :  { %p35_p8 = por %p34_p7, %p33_p6 }
  0x10   :  { %p36_p9 = pnand %p35_p8, %p31_p5 }
  0x12   :  { %39 = shalt.err (!%p36_p9)  }
  0x13   :  { %8 = dma.vmem_to_hbm [thread:$0]  %s6_s14, 128, %s128_s2, [#allocation0] }
  0x14   :  { %65 = dma.done.wait [#allocation0], 128  }
  0x15   :  { %66 = vsyncadd [#allocation0], 4294967168 }
  0x16   :  { %10 = vsyncpa [#allocation0], 1 }
  0x17   :  { %11 = vsyncpa [#allocation1], 0  ;;  %s12_s28 = sshll.u32 %s127_s1, 4  ;;  %s13_s28 = int_to_ptr.vmem [resolvable:$true] %s12_s28 }
  0x18   :  { %s40_s29 = scalar_lea.vmem %s13_s28, 128  ;;  %p45_p11 = scmp.lt.s32.totalorder %s13_s28, %s13_s28 }
  0x19   :  { %p41_p10 = scmp.ne.s32.totalorder %s13_s28, %s40_s29  ;;  %p46_p12 = scmp.lt.s32.totalorder %s40_s29, %s40_s29 }
  0x1b   :  { %p47_p13 = por %p46_p12, %p45_p11 }
  0x1d   :  { %p48_p0 = pnand %p47_p13, %p41_p10 }
  0x1f   :  { %51 = shalt.err (!%p48_p0)  }
  0x20   :  { %p53_p1 = scmp.ne.s32.totalorder %s87_s11, %s32_s0  ;;  %p56_p2 = scmp.lt.u32.totalorder %s32_s0, %s32_s0 }
  0x22   :  { %p57_p3 = por %p56_p2, %p34_p7 }
  0x24   :  { %p59_p4 = por %p57_p3, %p33_p6 }
  0x26   :  { %p60_p5 = pnand %p59_p4, %p53_p1 }
  0x28   :  { %63 = shalt.err (!%p60_p5)  }
  0x29   :  { %15 = dma.vmem_to_hbm [thread:$0]  %s13_s28, 128, %s87_s11, [#allocation1] }
  0x2a   :  { %67 = dma.done.wait [#allocation1], 128  }
  0x2b   :  { %68 = vsyncadd [#allocation1], 4294967168 }
  0x2c   :  { %17 = vsyncpa [#allocation1], 1 }

// kernel: _forward_complex.1
= control target key start
LH: loop header
LB: loop body
LE: loop exit
PB: predicated region body
PF: predicated region fallthrough
CT: control target
= control target key end

     0   :  { %s66_s0 = inlined_call_operand.vmem [shape: f32[2,1,128], index: 0, kind: input, shape index: {}, may-alias: {0,2}]   ;;  %s67_s1 = inlined_call_operand.vmem [shape: f32[2,1,128], index: 1, kind: input, shape index: {}]   ;;  %s68_s2 = inlined_call_operand.vmem [shape: f32[2,1,128], index: 2, kind: output, shape index: {}, may-alias: {0,2}]  }
   0x1   :  { %v11_v0 = vld [vmem:[%s66_s0] sm:$0x1]  ;;  %v30_v1 = vld [vmem:[%s66_s0 + $0x1] sm:$0x1] }
   0x2   :  { %v14_v2 = vld [vmem:[%s67_s1] sm:$0x1]  ;;  %v31_v3 = vld [vmem:[%s67_s1 + $0x1] sm:$0x1] }
   0x3   :  { %v17_v4 = vmul.f32 %v14_v2, %v11_v0  ;;  %v22_v5 = vmul.f32 %v30_v1, %v14_v2  ;;  %v18_v6 = vmul.f32 %v31_v3, %v30_v1  ;;  %v21_v7 = vmul.f32 %v31_v3, %v11_v0 }
   0x5   :  { %v19_v8 = vsub.f32 %v17_v4, %v18_v6  ;;  %v23_v9 = vadd.f32 %v22_v5, %v21_v7 }
   0x7   :  { %20 = vst [vmem:[%s68_s2] sm:$0x1] %v19_v8  ;;  %32 = vst [vmem:[%s68_s2 + $0x1] sm:$0x1] %v23_v9 }

// kernel: custom-call.3
= control target key start
LH: loop header
LB: loop body
LE: loop exit
PB: predicated region body
PF: predicated region fallthrough
CT: control target
= control target key end

     0   :  { %s59_s0 = inlined_call_operand.hbm [shape: c64[1,1,16], index: 0, kind: input, shape index: {}]   ;;  %s60_s1 = inlined_call_operand.vmem [shape: f32[1,1,16], index: 1, kind: output, shape index: {}]  }
   0x1   :  { %s2_s8 = scalar_lea.hbm %s59_s0, 16 }
   0x2   :  { %3 = vsyncpa [#allocation0], 0  ;;  %s4_s11 = sshll.u32 %s60_s1, 4  ;;  %s34_s14 = scalar_lea.hbm %s59_s0, 32  ;;  %s5_s11 = int_to_ptr.vmem [resolvable:$true] %s4_s11 }
   0x3   :  { %p11_p0 = scmp.ne.s32.totalorder %s2_s8, %s34_s14  ;;  %p13_p1 = scmp.lt.u32.totalorder %s2_s8, %s59_s0 }
   0x4   :  { %p14_p2 = scmp.lt.u32.totalorder %s34_s14, %s34_s14  ;;  %p16_p4 = scmp.lt.u32.totalorder %s34_s14, %s2_s8 }
   0x6   :  { %p15_p3 = por %p14_p2, %p13_p1 }
   0x8   :  { %p17_p5 = por %p16_p4, %p15_p3 }
   0xa   :  { %p18_p6 = pnand %p17_p5, %p11_p0 }
   0xc   :  { %21 = shalt.err (!%p18_p6)  }
   0xd   :  { %s22_s17 = scalar_lea.vmem %s5_s11, 16  ;;  %p27_p8 = scmp.lt.s32.totalorder %s5_s11, %s5_s11 }
   0xe   :  { %p23_p7 = scmp.ne.s32.totalorder %s5_s11, %s22_s17  ;;  %p28_p9 = scmp.lt.s32.totalorder %s22_s17, %s22_s17 }
  0x10   :  { %p29_p10 = por %p28_p9, %p27_p8 }
  0x12   :  { %p30_p11 = pnand %p29_p10, %p23_p7 }
  0x14   :  { %33 = shalt.err (!%p30_p11)  }
  0x15   :  { %7 = dma.hbm_to_vmem [thread:$0]  %s2_s8, 16, %s5_s11, [#allocation0] }
  0x16   :  { %35 = dma.done.wait [#allocation0], 16  }
  0x17   :  { %36 = vsyncadd [#allocation0], 4294967280 }
  0x18   :  { %9 = vsyncpa [#allocation0], 1 }

// kernel: custom-call.2
= control target key start
LH: loop header
LB: loop body
LE: loop exit
PB: predicated region body
PF: predicated region fallthrough
CT: control target
= control target key end

     0   :  { %2 = vsyncpa [#allocation0], 0  ;;  %s61_s0 = inlined_call_operand.hbm [shape: c64[1,1,16], index: 0, kind: input, shape index: {}]   ;;  %s62_s1 = inlined_call_operand.vmem [shape: f32[1,1,16], index: 1, kind: output, shape index: {}]  }
   0x1   :  { %s3_s8 = sshll.u32 %s62_s1, 4  ;;  %s9_s11 = scalar_lea.hbm %s61_s0, 16  ;;  %s4_s8 = int_to_ptr.vmem [resolvable:$true] %s3_s8 }
   0x2   :  { %p10_p0 = scmp.ne.s32.totalorder %s61_s0, %s9_s11  ;;  %s11_s16 = scalar_lea.hbm %s61_s0, 32 }
   0x3   :  { %p12_p1 = scmp.lt.u32.totalorder %s11_s16, %s9_s11  ;;  %p13_p2 = scmp.lt.u32.totalorder %s9_s11, %s61_s0 }
   0x5   :  { %p14_p3 = por %p13_p2, %p12_p1 }
   0x7   :  { %p15_p4 = pnand %p14_p3, %p10_p0 }
   0x9   :  { %18 = shalt.err (!%p15_p4)  }
   0xa   :  { %s19_s1 = scalar_lea.vmem %s4_s8, 16  ;;  %p24_p6 = scmp.lt.s32.totalorder %s4_s8, %s4_s8 }
   0xb   :  { %p20_p5 = scmp.ne.s32.totalorder %s4_s8, %s19_s1  ;;  %p25_p7 = scmp.lt.s32.totalorder %s19_s1, %s19_s1 }
   0xd   :  { %p26_p8 = por %p25_p7, %p24_p6 }
   0xf   :  { %p27_p9 = pnand %p26_p8, %p20_p5 }
  0x11   :  { %30 = shalt.err (!%p27_p9)  }
  0x12   :  { %6 = dma.hbm_to_vmem [thread:$0]  %s61_s0, 16, %s4_s8, [#allocation0] }
  0x13   :  { %31 = dma.done.wait [#allocation0], 16  }
  0x14   :  { %32 = vsyncadd [#allocation0], 4294967280 }
  0x15   :  { %8 = vsyncpa [#allocation0], 1 }

// kernel: tile.17
= control target key start
LH: loop header
LB: loop body
LE: loop exit
PB: predicated region body
PF: predicated region fallthrough
CT: control target
= control target key end

     0   :  { %s22_s0 = inlined_call_operand.vmem [shape: f32[16], index: 0, kind: input, shape index: {}]   ;;  %s23_s1 = inlined_call_operand.vmem [shape: f32[8,16], index: 1, kind: output, shape index: {}]  }
   0x1   :  { %v4_v0 = vld [vmem:[%s22_s0] ss:$0 sm:$0xff] }
   0x2   :  { %5 = vst [vmem:[%s23_s1] sm:$0xff] %v4_v0 }

// kernel: tile.19
= control target key start
LH: loop header
LB: loop body
LE: loop exit
PB: predicated region body
PF: predicated region fallthrough
CT: control target
= control target key end

     0   :  { %s67_s10 = smov 112   ;;  %s68_s11 = smov 80   ;;  %vm3_vm0 = vcmask 130048   ;;  %vm9_vm1 = vcmask 1048448   ;;  %vm15_vm2 = vcmask 917248   ;;  %vm21_vm3 = vcmask 786048   ;;  %s111_s0 = inlined_call_operand.vmem [shape: f32[8,16], index: 0, kind: input, shape index: {}]   ;;  %s112_s1 = inlined_call_operand.vmem [shape: f32[1,128], index: 1, kind: output, shape index: {}]  }
   0x1   :  { %v53_v0 = vld [vmem:[%s111_s0 + $0x7] sm:$0x1]   ;;  %v55_v1 = vld [vmem:[%s111_s0 + $0x5] sm:$0x1]   ;;  %v54_v2 = vld [vmem:[%s111_s0 + $0x6] sm:$0x1]  }
   0x2   :  { %7 = vrot.lane.b32.xlu0 %v53_v0, %s67_s10  ;;  %19 = vrot.lane.b32.xlu1 %v55_v1, %s68_s11  ;;  %v56_v3 = vld [vmem:[%s111_s0 + $0x4] sm:$0x1]   ;;  %v2_v4 = vld [vmem:[%s111_s0] sm:$0x1]   ;;  %s69_s18 = smov 96   ;;  %s70_s19 = smov 64  }
   0x3   :  { %4 = vst.msk [vmem:[#allocation0] sm:$0x1] %vm3_vm0, %v2_v4   ;;  %v57_v5 = vld [vmem:[%s111_s0 + $0x3] sm:$0x1]   ;;  %v58_v6 = vld [vmem:[%s111_s0 + $0x2] sm:$0x1]  }
   0x4   :  { %s71_s24 = smov 48   ;;  %s72_s25 = smov 32   ;;  %v59_v7 = vld [vmem:[%s111_s0 + $0x1] sm:$0x1]   ;;  %vm27_vm4 = vcmask 654848   ;;  %vm33_vm5 = vcmask 523648  }
   0x5   :  { %s73_s0 = smov 16   ;;  %vm39_vm6 = vcmask 392448   ;;  %vm45_vm7 = vcmask 261248  }
   0x6   :  { %13 = vrot.lane.b32.xlu0 %v54_v2, %s69_s18  ;;  %25 = vrot.lane.b32.xlu1 %v56_v3, %s70_s19 }
   0xa   :  { %31 = vrot.lane.b32.xlu0 %v57_v5, %s71_s24  ;;  %37 = vrot.lane.b32.xlu1 %v58_v6, %s72_s25 }
   0xe   :  { %43 = vrot.lane.b32.xlu0 %v59_v7, %s73_s0 }
  0x74   :  { %v8_v8 = vpop.permute.xlu0 %7   ;;  %v20_v9 = vpop.permute.xlu1 %19  }
  0x75   :  { %10 = vst.msk [vmem:[#allocation0] sm:$0x1] %vm9_vm1, %v8_v8  }
  0x78   :  { %v14_v10 = vpop.permute.xlu0 %13   ;;  %v26_v11 = vpop.permute.xlu1 %25  }
  0x79   :  { %16 = vst.msk [vmem:[#allocation0] sm:$0x1] %vm15_vm2, %v14_v10  }
  0x7a   :  { %22 = vst.msk [vmem:[#allocation0] sm:$0x1] %vm21_vm3, %v20_v9  }
  0x7b   :  { %28 = vst.msk [vmem:[#allocation0] sm:$0x1] %vm27_vm4, %v26_v11  }
  0x7c   :  { %v32_v12 = vpop.permute.xlu0 %31   ;;  %v38_v13 = vpop.permute.xlu1 %37  }
  0x7d   :  { %34 = vst.msk [vmem:[#allocation0] sm:$0x1] %vm33_vm5, %v32_v12  }
  0x7e   :  { %40 = vst.msk [vmem:[#allocation0] sm:$0x1] %vm39_vm6, %v38_v13  }
  0x80   :  { %v44_v14 = vpop.permute.xlu0 %43  }
  0x81   :  { %46 = vst.msk [vmem:[#allocation0] sm:$0x1] %vm45_vm7, %v44_v14  }
  0x88   :  { %v50_v15 = vld [vmem:[#allocation0] sm:$0x1] }
  0x89   :  { %52 = vst [vmem:[%s112_s1] sm:$0x1] %v50_v15 }

// kernel: custom-call.1
= control target key start
LH: loop header
LB: loop body
LE: loop exit
PB: predicated region body
PF: predicated region fallthrough
CT: control target
= control target key end

     0   :  { %s59_s0 = inlined_call_operand.hbm [shape: c64[2,4,16], index: 0, kind: input, shape index: {}]   ;;  %s60_s1 = inlined_call_operand.vmem [shape: f32[2,4,16], index: 1, kind: output, shape index: {}]  }
   0x1   :  { %s2_s8 = scalar_lea.hbm %s59_s0, 128 }
   0x2   :  { %3 = vsyncpa [#allocation0], 0  ;;  %s4_s11 = sshll.u32 %s60_s1, 4  ;;  %s34_s14 = scalar_lea.hbm %s59_s0, 256  ;;  %s5_s11 = int_to_ptr.vmem [resolvable:$true] %s4_s11 }
   0x3   :  { %p11_p0 = scmp.ne.s32.totalorder %s2_s8, %s34_s14  ;;  %p13_p1 = scmp.lt.u32.totalorder %s2_s8, %s59_s0 }
   0x4   :  { %p14_p2 = scmp.lt.u32.totalorder %s34_s14, %s34_s14  ;;  %p16_p4 = scmp.lt.u32.totalorder %s34_s14, %s2_s8 }
   0x6   :  { %p15_p3 = por %p14_p2, %p13_p1 }
   0x8   :  { %p17_p5 = por %p16_p4, %p15_p3 }
   0xa   :  { %p18_p6 = pnand %p17_p5, %p11_p0 }
   0xc   :  { %21 = shalt.err (!%p18_p6)  }
   0xd   :  { %s22_s17 = scalar_lea.vmem %s5_s11, 128  ;;  %p27_p8 = scmp.lt.s32.totalorder %s5_s11, %s5_s11 }
   0xe   :  { %p23_p7 = scmp.ne.s32.totalorder %s5_s11, %s22_s17  ;;  %p28_p9 = scmp.lt.s32.totalorder %s22_s17, %s22_s17 }
  0x10   :  { %p29_p10 = por %p28_p9, %p27_p8 }
  0x12   :  { %p30_p11 = pnand %p29_p10, %p23_p7 }
  0x14   :  { %33 = shalt.err (!%p30_p11)  }
  0x15   :  { %7 = dma.hbm_to_vmem [thread:$0]  %s2_s8, 128, %s5_s11, [#allocation0] }
  0x16   :  { %35 = dma.done.wait [#allocation0], 128  }
  0x17   :  { %36 = vsyncadd [#allocation0], 4294967168 }
  0x18   :  { %9 = vsyncpa [#allocation0], 1 }

// kernel: custom-call
= control target key start
LH: loop header
LB: loop body
LE: loop exit
PB: predicated region body
PF: predicated region fallthrough
CT: control target
= control target key end

     0   :  { %2 = vsyncpa [#allocation0], 0  ;;  %s61_s0 = inlined_call_operand.hbm [shape: c64[2,4,16], index: 0, kind: input, shape index: {}]   ;;  %s62_s1 = inlined_call_operand.vmem [shape: f32[2,4,16], index: 1, kind: output, shape index: {}]  }
   0x1   :  { %s3_s8 = sshll.u32 %s62_s1, 4  ;;  %s9_s11 = scalar_lea.hbm %s61_s0, 128  ;;  %s4_s8 = int_to_ptr.vmem [resolvable:$true] %s3_s8 }
   0x2   :  { %p10_p0 = scmp.ne.s32.totalorder %s61_s0, %s9_s11  ;;  %s11_s16 = scalar_lea.hbm %s61_s0, 256 }
   0x3   :  { %p12_p1 = scmp.lt.u32.totalorder %s11_s16, %s9_s11  ;;  %p13_p2 = scmp.lt.u32.totalorder %s9_s11, %s61_s0 }
   0x5   :  { %p14_p3 = por %p13_p2, %p12_p1 }
   0x7   :  { %p15_p4 = pnand %p14_p3, %p10_p0 }
   0x9   :  { %18 = shalt.err (!%p15_p4)  }
   0xa   :  { %s19_s1 = scalar_lea.vmem %s4_s8, 128  ;;  %p24_p6 = scmp.lt.s32.totalorder %s4_s8, %s4_s8 }
   0xb   :  { %p20_p5 = scmp.ne.s32.totalorder %s4_s8, %s19_s1  ;;  %p25_p7 = scmp.lt.s32.totalorder %s19_s1, %s19_s1 }
   0xd   :  { %p26_p8 = por %p25_p7, %p24_p6 }
   0xf   :  { %p27_p9 = pnand %p26_p8, %p20_p5 }
  0x11   :  { %30 = shalt.err (!%p27_p9)  }
  0x12   :  { %6 = dma.hbm_to_vmem [thread:$0]  %s61_s0, 128, %s4_s8, [#allocation0] }
  0x13   :  { %31 = dma.done.wait [#allocation0], 128  }
  0x14   :  { %32 = vsyncadd [#allocation0], 4294967168 }
  0x15   :  { %8 = vsyncpa [#allocation0], 1 }

// kernel: custom-call.4
= control target key start
LH: loop header
LB: loop body
LE: loop exit
PB: predicated region body
PF: predicated region fallthrough
CT: control target
= control target key end

     0   :  { %s126_s0 = inlined_call_operand.vmem [shape: f32[2,4,16], index: 0, kind: input, shape index: {}]   ;;  %s127_s1 = inlined_call_operand.vmem [shape: f32[2,4,16], index: 1, kind: input, shape index: {}]   ;;  %s128_s2 = inlined_call_operand.hbm [shape: c64[2,4,16], index: 2, kind: output, shape index: {}]  }
   0x1   :  { %s87_s11 = scalar_lea.hbm %s128_s2, 128 }
   0x2   :  { %4 = vsyncpa [#allocation0], 0  ;;  %s5_s14 = sshll.u32 %s126_s0, 4  ;;  %s6_s14 = int_to_ptr.vmem [resolvable:$true] %s5_s14 }
   0x3   :  { %s18_s15 = scalar_lea.vmem %s6_s14, 128  ;;  %p23_p1 = scmp.lt.s32.totalorder %s6_s14, %s6_s14 }
   0x4   :  { %p19_p0 = scmp.ne.s32.totalorder %s6_s14, %s18_s15  ;;  %p24_p2 = scmp.lt.s32.totalorder %s18_s15, %s18_s15 }
   0x6   :  { %p25_p3 = por %p24_p2, %p23_p1 }
   0x8   :  { %p26_p4 = pnand %p25_p3, %p19_p0 }
   0xa   :  { %29 = shalt.err (!%p26_p4)  }
   0xb   :  { %p31_p5 = scmp.ne.s32.totalorder %s128_s2, %s87_s11  ;;  %s32_s0 = scalar_lea.hbm %s128_s2, 256 }
   0xc   :  { %p33_p6 = scmp.lt.u32.totalorder %s32_s0, %s87_s11  ;;  %p34_p7 = scmp.lt.u32.totalorder %s87_s11, %s128_s2 }
   0xe   :  { %p35_p8 = por %p34_p7, %p33_p6 }
  0x10   :  { %p36_p9 = pnand %p35_p8, %p31_p5 }
  0x12   :  { %39 = shalt.err (!%p36_p9)  }
  0x13   :  { %8 = dma.vmem_to_hbm [thread:$0]  %s6_s14, 128, %s128_s2, [#allocation0] }
  0x14   :  { %65 = dma.done.wait [#allocation0], 128  }
  0x15   :  { %66 = vsyncadd [#allocation0], 4294967168 }
  0x16   :  { %10 = vsyncpa [#allocation0], 1 }
  0x17   :  { %11 = vsyncpa [#allocation1], 0  ;;  %s12_s28 = sshll.u32 %s127_s1, 4  ;;  %s13_s28 = int_to_ptr.vmem [resolvable:$true] %s12_s28 }
  0x18   :  { %s40_s29 = scalar_lea.vmem %s13_s28, 128  ;;  %p45_p11 = scmp.lt.s32.totalorder %s13_s28, %s13_s28 }
  0x19   :  { %p41_p10 = scmp.ne.s32.totalorder %s13_s28, %s40_s29  ;;  %p46_p12 = scmp.lt.s32.totalorder %s40_s29, %s40_s29 }
  0x1b   :  { %p47_p13 = por %p46_p12, %p45_p11 }
  0x1d   :  { %p48_p0 = pnand %p47_p13, %p41_p10 }
  0x1f   :  { %51 = shalt.err (!%p48_p0)  }
  0x20   :  { %p53_p1 = scmp.ne.s32.totalorder %s87_s11, %s32_s0  ;;  %p56_p2 = scmp.lt.u32.totalorder %s32_s0, %s32_s0 }
  0x22   :  { %p57_p3 = por %p56_p2, %p34_p7 }
  0x24   :  { %p59_p4 = por %p57_p3, %p33_p6 }
  0x26   :  { %p60_p5 = pnand %p59_p4, %p53_p1 }
  0x28   :  { %63 = shalt.err (!%p60_p5)  }
  0x29   :  { %15 = dma.vmem_to_hbm [thread:$0]  %s13_s28, 128, %s87_s11, [#allocation1] }
  0x2a   :  { %67 = dma.done.wait [#allocation1], 128  }
  0x2b   :  { %68 = vsyncadd [#allocation1], 4294967168 }
  0x2c   :  { %17 = vsyncpa [#allocation1], 1 }

// kernel: _forward_complex.1
= control target key start
LH: loop header
LB: loop body
LE: loop exit
PB: predicated region body
PF: predicated region fallthrough
CT: control target
= control target key end

     0   :  { %s66_s0 = inlined_call_operand.vmem [shape: f32[2,1,128], index: 0, kind: input, shape index: {}, may-alias: {0,2}]   ;;  %s67_s1 = inlined_call_operand.vmem [shape: f32[2,1,128], index: 1, kind: input, shape index: {}]   ;;  %s68_s2 = inlined_call_operand.vmem [shape: f32[2,1,128], index: 2, kind: output, shape index: {}, may-alias: {0,2}]  }
   0x1   :  { %v11_v0 = vld [vmem:[%s66_s0] sm:$0x1]  ;;  %v30_v1 = vld [vmem:[%s66_s0 + $0x1] sm:$0x1] }
   0x2   :  { %v14_v2 = vld [vmem:[%s67_s1] sm:$0x1]  ;;  %v31_v3 = vld [vmem:[%s67_s1 + $0x1] sm:$0x1] }
   0x3   :  { %v17_v4 = vmul.f32 %v14_v2, %v11_v0  ;;  %v22_v5 = vmul.f32 %v30_v1, %v14_v2  ;;  %v18_v6 = vmul.f32 %v31_v3, %v30_v1  ;;  %v21_v7 = vmul.f32 %v31_v3, %v11_v0 }
   0x5   :  { %v19_v8 = vsub.f32 %v17_v4, %v18_v6  ;;  %v23_v9 = vadd.f32 %v22_v5, %v21_v7 }
   0x7   :  { %20 = vst [vmem:[%s68_s2] sm:$0x1] %v19_v8  ;;  %32 = vst [vmem:[%s68_s2 + $0x1] sm:$0x1] %v23_v9 }

</bundles_post_ra>
